<compile_context>
chip_gen: v7x
topology: tpu7x:2x2x1
jax: 0.10.0
libtpu: 0.0.40
codegen_flags: <defaults>
</compile_context>

<pallas_src>
import jax
import jax.numpy as jnp
from jax.experimental import pallas as pl
from jax.experimental.pallas import tpu as pltpu

# Logical (PyTorch) sizes.
D_IN, H1, H2, D_OUT = 10, 100, 200, 10
# Padded, lane-aligned sizes: 10->128, 100->128, 200->256, 10->128.
D_IN_P, H1_P, H2_P, D_OUT_P = 128, 128, 256, 128
# Packed-buffer layouts (all 128-lane aligned segments):
#   w12  : [ w1 (0:128) | w2 (128:384) ]                -> (128, 384)
#   bias : [ b1 (0:128) | b2 (128:384) | b3 (384:512) ] -> (Bp, 512)
#   out  : [ y1 (0:128) | -y2 (128:256) | y1-y2 (256:384) ] -> (Bp, 384)


def mlp_kernel(x_ref, w12_ref, w3_ref, b_ref, out_ref, xpad_ref):
    B = x_ref.shape[0]

    # Build the zero-padded x tile in VMEM (no wrapper-side pad fusion).
    # Padded lanes/rows are exactly zero so the v4 - x cancellation and the
    # row-sum epilogue stay exact.
    xpad_ref[...] = jnp.zeros_like(xpad_ref)
    xpad_ref[0:B, 0:D_IN] = x_ref[...]
    x = xpad_ref[...]                                             # (Bp, 128) f32

    # Three fused Linear layers on the MXU, f32 end-to-end (f32 accumulation).
    v1 = jnp.dot(x, w12_ref[:, 0:H1_P],
                 preferred_element_type=jnp.float32) + b_ref[:, 0:H1_P]            # (Bp, 128)
    v2 = jnp.dot(v1, w12_ref[:, H1_P:H1_P + H2_P],
                 preferred_element_type=jnp.float32) + b_ref[:, H1_P:H1_P + H2_P]  # (Bp, 256)
    v3 = jnp.dot(v2, w3_ref[...],
                 preferred_element_type=jnp.float32) + b_ref[:, H1_P + H2_P:]      # (Bp, 128)

    # Padded lanes of v3 (cols >= 10) are exactly zero (zero weight cols + zero
    # bias lanes), so the row-sum below equals the unpadded sum.
    # v4 = v3 * v3.sum(dim=1, keepdim=True).clamp(min=1) + v3
    s = jnp.maximum(jnp.sum(v3, axis=1, keepdims=True), 1.0)
    v4 = v3 * s + v3

    # y1 = relu(v4 - x); padded lanes stay zero, wrapper slices real columns.
    y1 = jnp.maximum(v4 - x, 0.0)

    # TODO(synk): original `y2 = v2 - v1` is shape-incompatible ((B,200)-(B,100))
    # and would raise in PyTorch; we keep the leading-slice interpretation
    # (first 128 columns of v2; only lanes < 100 are meaningful).
    neg_y2 = v1 - v2[:, 0:H1_P]                                   # (Bp, 128)

    # Single packed, lane-dense output: three 128-lane-aligned full-tile stores.
    out_ref[:, 0:128] = y1
    out_ref[:, 128:256] = neg_y2
    # TODO(synk): original `y1 - y2` is also shape-incompatible; only lanes < 10
    # of this segment are meaningful (wrapper slices them).
    out_ref[:, 256:384] = y1 + neg_y2


def prepare_params(params, bp=8):
    """One-time parameter prep (outside the hot path).

    * Weights use [in_features, out_features] layout so the kernel computes
      x @ W (transpose real nn.Linear [out, in] weights before calling this).
    * Everything stays f32 (overhead-bound kernel; exact PyTorch parity).
    * w1|w2 packed into one (128, 384) buffer, b1|b2|b3 into one pre-broadcast
      (bp, 512) buffer -> 4 pallas_call inputs total.
    * Padded rows/cols/lanes are exactly zero.
    """
    w1, b1, w2, b2, w3, b3 = params

    def pad_w(w, rows, cols):
        return jnp.zeros((rows, cols), jnp.float32).at[:w.shape[0], :w.shape[1]].set(w)

    def pad_b(b, cols):
        return jnp.zeros((cols,), jnp.float32).at[:b.shape[0]].set(b)

    w12 = jnp.concatenate([pad_w(w1, D_IN_P, H1_P), pad_w(w2, H1_P, H2_P)], axis=1)
    w3p = pad_w(w3, H2_P, D_OUT_P)
    b_all = jnp.concatenate([pad_b(b1, H1_P), pad_b(b2, H2_P), pad_b(b3, D_OUT_P)])
    b_all = jnp.broadcast_to(b_all[None, :], (bp, H1_P + H2_P + D_OUT_P))
    return w12, w3p, jnp.asarray(b_all)


@jax.jit
def model_forward(x, inp, prepped):
    w12, w3p, b_all = prepped
    B = x.shape[0]
    Bp = b_all.shape[0]                      # padded batch chosen at prep time
    assert Bp % 8 == 0 and Bp >= B, "prepare_params bp must cover the padded batch"

    vmem = pl.BlockSpec(memory_space=pltpu.MemorySpace.VMEM)
    out = pl.pallas_call(
        mlp_kernel,
        out_shape=jax.ShapeDtypeStruct((Bp, 3 * 128), jnp.float32),
        in_specs=[vmem, vmem, vmem, vmem],
        out_specs=vmem,
        scratch_shapes=[pltpu.VMEM((Bp, D_IN_P), jnp.float32)],   # padded-x tile
    )(x, w12, w3p, b_all)

    y1 = out[:B, 0:D_OUT]
    neg_y2 = out[:B, 128:128 + H1]
    y1_minus_y2 = out[:B, 256:256 + D_OUT]
    # `inp` is passed through unchanged, exactly as in the PyTorch forward.
    return y1, neg_y2, y1_minus_y2, inp


def init_linear(kw, kb, fan_in, fan_out):
    # Deterministic PyTorch-style init: U(-1/sqrt(fan_in), 1/sqrt(fan_in)).
    # Weights produced directly in [in_features, out_features] layout.
    bound = float(fan_in) ** -0.5
    w = jax.random.uniform(kw, (fan_in, fan_out), jnp.float32, -bound, bound)
    b = jax.random.uniform(kb, (fan_out,), jnp.float32, -bound, bound)
    return w, b


if __name__ == "__main__":
    key = jax.random.PRNGKey(0)
    keys = jax.random.split(key, 8)

    # Shapes from the module: x (1, 10), inp (2, 10).
    x = jax.random.normal(keys[0], (1, 10), jnp.float32)
    inp = jax.random.normal(keys[1], (2, 10), jnp.float32)

    w1, b1 = init_linear(keys[2], keys[3], D_IN, H1)
    w2, b2 = init_linear(keys[4], keys[5], H1, H2)
    w3, b3 = init_linear(keys[6], keys[7], H2, D_OUT)

    # One-time parameter prep (outside the hot path); bp=8 covers B=1.
    prepped = prepare_params((w1, b1, w2, b2, w3, b3), bp=8)
    jax.block_until_ready(prepped)

    outs = model_forward(x, inp, prepped)
    jax.block_until_ready(outs)
    print("KERNEL_OK")
</pallas_src>

<mosaic_0001>
module attributes {stable_mosaic.version = 11 : i64} {
  func.func @mlp_kernel(%arg0: memref<1x10xf32, #tpu.memory_space<vmem>>, %arg1: memref<128x384xf32, #tpu.memory_space<vmem>>, %arg2: memref<256x128xf32, #tpu.memory_space<vmem>>, %arg3: memref<8x512xf32, #tpu.memory_space<vmem>>, %arg4: memref<8x384xf32, #tpu.memory_space<vmem>>, %arg5: memref<8x128xf32, #tpu.memory_space<vmem>>) attributes {dimension_semantics = [], scalar_prefetch = 0 : i64, scratch_operands = 1 : i64, tpu.core_type = #tpu.core_type<tc>} {
    %cst = arith.constant 0.000000e+00 : f32
    %0 = vector.broadcast %cst : f32 to vector<8x128xf32>
    %c0 = arith.constant 0 : index
    %c0_0 = arith.constant 0 : index
    %1 = vector.load %arg5[%c0, %c0_0] : memref<8x128xf32, #tpu.memory_space<vmem>>, vector<8x128xf32>
    tpu.vector_store %arg5[%c0, %c0_0], %0 {strides = array<i32>} : memref<8x128xf32, #tpu.memory_space<vmem>>, vector<8x128xf32>,
    %c0_1 = arith.constant 0 : index
    %c0_2 = arith.constant 0 : index
    %2 = vector.load %arg0[%c0_1, %c0_2] : memref<1x10xf32, #tpu.memory_space<vmem>>, vector<1x10xf32>
    %c0_3 = arith.constant 0 : index
    %c0_4 = arith.constant 0 : index
    %3 = vector.load %arg5[%c0_3, %c0_4] : memref<8x128xf32, #tpu.memory_space<vmem>>, vector<1x10xf32>
    tpu.vector_store %arg5[%c0_3, %c0_4], %2 {strides = array<i32>} : memref<8x128xf32, #tpu.memory_space<vmem>>, vector<1x10xf32>,
    %c0_5 = arith.constant 0 : index
    %c0_6 = arith.constant 0 : index
    %4 = vector.load %arg5[%c0_5, %c0_6] : memref<8x128xf32, #tpu.memory_space<vmem>>, vector<8x128xf32>
    %c0_7 = arith.constant 0 : index
    %c0_8 = arith.constant 0 : index
    %5 = vector.load %arg1[%c0_7, %c0_8] : memref<128x384xf32, #tpu.memory_space<vmem>>, vector<128x128xf32>
    %cst_9 = arith.constant dense<0.000000e+00> : vector<8x128xf32>
    %6 = tpu.matmul %4, %5, %cst_9 {dimension_numbers = #tpu.dot_dimension_numbers<[1], [0], [0], [1], [0, 0, 1, 1], [], []>} : vector<8x128xf32>, vector<128x128xf32>, vector<8x128xf32> -> vector<8x128xf32>
    %c0_10 = arith.constant 0 : index
    %c0_11 = arith.constant 0 : index
    %7 = vector.load %arg3[%c0_10, %c0_11] : memref<8x512xf32, #tpu.memory_space<vmem>>, vector<8x128xf32>
    %8 = arith.addf %6, %7 : vector<8x128xf32>
    %c0_12 = arith.constant 0 : index
    %c128 = arith.constant 128 : index
    %9 = vector.load %arg1[%c0_12, %c128] : memref<128x384xf32, #tpu.memory_space<vmem>>, vector<128x256xf32>
    %cst_13 = arith.constant dense<0.000000e+00> : vector<8x256xf32>
    %10 = tpu.matmul %8, %9, %cst_13 {dimension_numbers = #tpu.dot_dimension_numbers<[1], [0], [0], [1], [0, 0, 1, 1], [], []>} : vector<8x128xf32>, vector<128x256xf32>, vector<8x256xf32> -> vector<8x256xf32>
    %c0_14 = arith.constant 0 : index
    %c128_15 = arith.constant 128 : index
    %11 = vector.load %arg3[%c0_14, %c128_15] : memref<8x512xf32, #tpu.memory_space<vmem>>, vector<8x256xf32>
    %12 = arith.addf %10, %11 : vector<8x256xf32>
    %c0_16 = arith.constant 0 : index
    %c0_17 = arith.constant 0 : index
    %13 = vector.load %arg2[%c0_16, %c0_17] : memref<256x128xf32, #tpu.memory_space<vmem>>, vector<256x128xf32>
    %cst_18 = arith.constant dense<0.000000e+00> : vector<8x128xf32>
    %14 = tpu.matmul %12, %13, %cst_18 {dimension_numbers = #tpu.dot_dimension_numbers<[1], [0], [0], [1], [0, 0, 1, 1], [], []>} : vector<8x256xf32>, vector<256x128xf32>, vector<8x128xf32> -> vector<8x128xf32>
    %c0_19 = arith.constant 0 : index
    %c384 = arith.constant 384 : index
    %15 = vector.load %arg3[%c0_19, %c384] : memref<8x512xf32, #tpu.memory_space<vmem>>, vector<8x128xf32>
    %16 = arith.addf %14, %15 : vector<8x128xf32>
    %cst_20 = arith.constant dense<0.000000e+00> : vector<8xf32>
    %17 = vector.multi_reduction <add>, %16, %cst_20 [1] : vector<8x128xf32> to vector<8xf32>
    %18 = vector.shape_cast %17 : vector<8xf32> to vector<8x1xf32>
    %cst_21 = arith.constant 1.000000e+00 : f32
    %19 = vector.broadcast %cst_21 : f32 to vector<8x1xf32>
    %20 = arith.maximumf %18, %19 : vector<8x1xf32>
    %21 = vector.broadcast %20 : vector<8x1xf32> to vector<8x128xf32>
    %22 = arith.mulf %16, %21 : vector<8x128xf32>
    %23 = arith.addf %22, %16 : vector<8x128xf32>
    %24 = arith.subf %23, %4 : vector<8x128xf32>
    %cst_22 = arith.constant 0.000000e+00 : f32
    %25 = vector.broadcast %cst_22 : f32 to vector<8x128xf32>
    %26 = arith.maximumf %24, %25 : vector<8x128xf32>
    %27 = vector.extract_strided_slice %12 {offsets = [0, 0], sizes = [8, 128], strides = [1, 1]} : vector<8x256xf32> to vector<8x128xf32>
    %28 = arith.subf %8, %27 : vector<8x128xf32>
    %c0_23 = arith.constant 0 : index
    %c0_24 = arith.constant 0 : index
    %29 = vector.load %arg4[%c0_23, %c0_24] : memref<8x384xf32, #tpu.memory_space<vmem>>, vector<8x128xf32>
    tpu.vector_store %arg4[%c0_23, %c0_24], %26 {strides = array<i32>} : memref<8x384xf32, #tpu.memory_space<vmem>>, vector<8x128xf32>,
    %c0_25 = arith.constant 0 : index
    %c128_26 = arith.constant 128 : index
    %30 = vector.load %arg4[%c0_25, %c128_26] : memref<8x384xf32, #tpu.memory_space<vmem>>, vector<8x128xf32>
    tpu.vector_store %arg4[%c0_25, %c128_26], %28 {strides = array<i32>} : memref<8x384xf32, #tpu.memory_space<vmem>>, vector<8x128xf32>,
    %31 = arith.addf %26, %28 : vector<8x128xf32>
    %c0_27 = arith.constant 0 : index
    %c256 = arith.constant 256 : index
    %32 = vector.load %arg4[%c0_27, %c256] : memref<8x384xf32, #tpu.memory_space<vmem>>, vector<8x128xf32>
    tpu.vector_store %arg4[%c0_27, %c256], %31 {strides = array<i32>} : memref<8x384xf32, #tpu.memory_space<vmem>>, vector<8x128xf32>,
    return
  }
}

</mosaic_0001>

<bundles_post_ra>
// kernel: model_forward.1
= control target key start
LH: loop header
LB: loop body
LE: loop exit
PB: predicated region body
PF: predicated region fallthrough
CT: control target
= control target key end

     0   :  { %9 = vsyncpa [#allocation4], 0  ;;  %s724_s0 = inlined_call_operand.vmem [shape: f32[1,10], index: 0, kind: input, shape index: {}]   ;;  %s725_s1 = inlined_call_operand.hbm [shape: f32[128,384], index: 1, kind: input, shape index: {}]   ;;  %s726_s2 = inlined_call_operand.hbm [shape: f32[256,128], index: 2, kind: input, shape index: {}]   ;;  %s727_s3 = inlined_call_operand.hbm [shape: f32[8,512], index: 3, kind: input, shape index: {}]   ;;  %s728_s4 = inlined_call_operand.vmem [shape: f32[8,384], index: 4, kind: output, shape index: {}]  }
   0x1   :  { %10 = vsyncpa [#allocation6], 0  ;;  %s629_s15 = smov [#allocation5]   ;;  %s559_s19 = scalar_lea.hbm %s726_s2, 4096 }
   0x2   :  { %s30_s16 = sshll.u32 %s629_s15, 4  ;;  %p560_p0 = scmp.ne.s32.totalorder %s726_s2, %s559_s19  ;;  %s31_s16 = int_to_ptr.vmem [resolvable:$true] %s30_s16 }
   0x3   :  { %p563_p1 = scmp.lt.u32.totalorder %s559_s19, %s726_s2 }
   0x5   :  { %p565_p2 = pnand %p563_p1, %p560_p0 }
   0x7   :  { %568 = shalt.err (!%p565_p2)
}
   0x8   :  { %s569_s24 = scalar_lea.vmem %s31_s16, 4096  ;;  %p574_p4 = scmp.lt.s32.totalorder %s31_s16, %s31_s16 }
   0x9   :  { %p570_p3 = scmp.ne.s32.totalorder %s31_s16, %s569_s24  ;;  %p575_p5 = scmp.lt.s32.totalorder %s569_s24, %s569_s24 }
   0xb   :  { %p576_p6 = por %p575_p5, %p574_p4 }
   0xd   :  { %p577_p7 = pnand %p576_p6, %p570_p3 }
   0xf   :  { %580 = shalt.err (!%p577_p7)
}
  0x10   :  { %s630_s25 = smov 128   ;;  %s631_s26 = smov 8  }
  0x11   :  { %36 = dma.hbm_to_vmem [thread:$0]  %s726_s2, 4096, %s31_s16, [#allocation6], %s630_s25, %s630_s25, %s631_s26  }
  0x12   :  { %s632_s29 = smov [#allocation3]   ;;  %s581_s7 = scalar_lea.hbm %s725_s1, 6144 }
  0x13   :  { %s18_s30 = sshll.u32 %s632_s29, 4  ;;  %p582_p8 = scmp.ne.s32.totalorder %s725_s1, %s581_s7  ;;  %s19_s30 = int_to_ptr.vmem [resolvable:$true] %s18_s30 }
  0x14   :  { %p585_p9 = scmp.lt.u32.totalorder %s581_s7, %s725_s1 }
  0x16   :  { %p587_p10 = pnand %p585_p9, %p582_p8 }
  0x18   :  { %590 = shalt.err (!%p587_p10)
}
  0x19   :  { %s591_s12 = scalar_lea.vmem %s19_s30, 6144  ;;  %p596_p12 = scmp.lt.s32.totalorder %s19_s30, %s19_s30 }
  0x1a   :  { %p592_p11 = scmp.ne.s32.totalorder %s19_s30, %s591_s12  ;;  %p597_p13 = scmp.lt.s32.totalorder %s591_s12, %s591_s12 }
  0x1c   :  { %p598_p0 = por %p597_p13, %p596_p12 }
  0x1e   :  { %p599_p1 = pnand %p598_p0, %p592_p11 }
  0x20   :  { %602 = shalt.err (!%p599_p1)
}
  0x21   :  { %s633_s2 = smov 384   ;;  %s634_s13 = smov 24  }
  0x22   :  { %24 = dma.hbm_to_vmem [thread:$0]  %s725_s1, 6144, %s19_s30, [#allocation4], %s633_s2, %s633_s2, %s634_s13  }
  0x23   :  { %s635_s16 = smov [#allocation7]   ;;  %s603_s20 = scalar_lea.hbm %s727_s3, 512 }
  0x24   :  { %s43_s17 = sshll.u32 %s635_s16, 4  ;;  %p604_p2 = scmp.ne.s32.totalorder %s727_s3, %s603_s20  ;;  %s44_s17 = int_to_ptr.vmem [resolvable:$true] %s43_s17 }
  0x25   :  { %p607_p3 = scmp.lt.u32.totalorder %s603_s20, %s727_s3 }
  0x27   :  { %p609_p4 = pnand %p607_p3, %p604_p2 }
  0x29   :  { %612 = shalt.err (!%p609_p4)
}
  0x2a   :  { %s613_s25 = scalar_lea.vmem %s44_s17, 512  ;;  %p618_p6 = scmp.lt.s32.totalorder %s44_s17, %s44_s17 }
  0x2b   :  { %p614_p5 = scmp.ne.s32.totalorder %s44_s17, %s613_s25  ;;  %p619_p7 = scmp.lt.s32.totalorder %s613_s25, %s613_s25 }
  0x2d   :  { %p620_p8 = por %p619_p7, %p618_p6 }
  0x2f   :  { %p621_p9 = pnand %p620_p8, %p614_p5 }
  0x31   :  { %624 = shalt.err (!%p621_p9)
}
  0x32   :  { %46 = dma.hbm_to_vmem [thread:$0]  %s727_s3, 512, %s44_s17, [#allocation6]  }
  0x33   :  { %625 = dma.done.wait [#allocation4], 6144  }
  0x34   :  { %626 = vsyncadd [#allocation4], 4294961152 }
  0x35   :  { %627 = dma.done.wait [#allocation6], 4608  }
  0x36   :  { %628 = vsyncadd [#allocation6], 4294962688  ;;  %v636_v0 = vmov 0.0|0.0   ;;  %v637_v1 = vmov 0.0   ;;  %vm638_vm0 = vmmov 0   ;;  %v61_v2 = vld [vmem:[#allocation3] sm:$0xff] }
  0x37   :  { %461 = vmatprep.subr.bf16.mxu0 %v636_v0  ;;  %56 = vst [vmem:[#allocation2] sm:$0xff] %v637_v1  ;;  %458 = vmatprep.mubr.msk.f32.mxu0 %vm638_vm0, %v637_v1  ;;  %v62_v3 = vld [vmem:[#allocation3 + $0x18] sm:$0xff]  ;;  %v63_v4 = vld [vmem:[#allocation3 + $0x30] sm:$0xff]  ;;  %v64_v6 = vld [vmem:[#allocation3 + $0x48] sm:$0xff]  ;;  %vm58_vm1 = vcmask 73728  }
  0x38   :  { %246 = vmatprep.mubr.f32.mxu1 %v637_v1  ;;  %v462_v5 = vpack.c.bf16 %v62_v3, %v61_v2  ;;  %v465_v7 = vpack.c.bf16 %v64_v6, %v63_v4  ;;  %v65_v8 = vld [vmem:[#allocation3 + $0x60] sm:$0xff]  ;;  %v66_v9 = vld [vmem:[#allocation3 + $0x78] sm:$0xff]  ;;  %v149_v11 = vld [vmem:[#allocation3 + $0x10] sm:$0xff] }
  0x39   :  { %v57_v10 = vld [vmem:[%s724_s0] sm:$0x1]  ;;  %v67_v12 = vld [vmem:[#allocation3 + $0x90] sm:$0xff]  ;;  %v68_v13 = vld [vmem:[#allocation3 + $0xa8] sm:$0xff]  ;;  %v468_v17 = vpack.c.bf16 %v66_v9, %v65_v8 }
  0x3a   :  { %463 = vmatpush3.bf16.msra.mxu0 %v462_v5  ;;  %59 = vst.msk [vmem:[#allocation2] sm:$0x1] %vm58_vm1, %v57_v10  ;;  %v151_v14 = vld [vmem:[#allocation3 + $0x28] sm:$0xff]  ;;  %v150_v16 = vld [vmem:[#allocation3 + $0x20] sm:$0xff]  ;;  %v155_v21 = vld [vmem:[#allocation3 + $0x58] sm:$0xff]  ;;  %v471_v28 = vpack.c.bf16 %v68_v13, %v67_v12 }
  0x3b   :  { %464 = vmatprep.subr.bf16.mxu0 %v636_v0  ;;  %v148_v15 = vld [vmem:[#allocation3 + $0x8] sm:$0xff]  ;;  %v485_v18 = vpack.c.bf16 %v151_v14, %v149_v11  ;;  %v153_v20 = vld [vmem:[#allocation3 + $0x40] sm:$0xff]  ;;  %v152_v22 = vld [vmem:[#allocation3 + $0x38] sm:$0xff] }
  0x3c   :  { %v487_v19 = vpack.c.bf16 %v150_v16, %v148_v15  ;;  %v489_v23 = vpack.c.bf16 %v155_v21, %v153_v20  ;;  %v154_v24 = vld [vmem:[#allocation3 + $0x50] sm:$0xff]  ;;  %v159_v26 = vld [vmem:[#allocation3 + $0x88] sm:$0xff]  ;;  %v69_v29 = vld [vmem:[#allocation3 + $0xc0] sm:$0xff] }
  0x3d   :  { %v157_v25 = vld [vmem:[#allocation3 + $0x70] sm:$0xff]  ;;  %486 = vmatprep.subr.bf16.mxu1 %v485_v18  ;;  %v491_v27 = vpack.c.bf16 %v154_v24, %v152_v22  ;;  %v156_v31 = vld [vmem:[#allocation3 + $0x68] sm:$0xff]  ;;  %v158_v32 = vld [vmem:[#allocation3 + $0x80] sm:$0xff] }
  0x3e   :  { %466 = vmatpush3.bf16.msra.mxu0 %v465_v7  ;;  %488 = vmatpush1.bf16.msra.mxu1 %v487_v19  ;;  %v493_v30 = vpack.c.bf16 %v159_v26, %v157_v25  ;;  %v70_v33 = vld [vmem:[#allocation3 + $0xd8] sm:$0xff]  ;;  %v161_v34 = vld [vmem:[#allocation3 + $0xa0] sm:$0xff]  ;;  %v495_v36 = vpack.c.bf16 %v158_v32, %v156_v31  ;;  %v71_v38 = vld [vmem:[#allocation3 + $0xf0] sm:$0xff] }
  0x3f   :  { %467 = vmatprep.subr.bf16.mxu0 %v636_v0  ;;  %490 = vmatprep.subr.bf16.mxu1 %v489_v23  ;;  %v163_v35 = vld [vmem:[#allocation3 + $0xb8] sm:$0xff]  ;;  %v474_v37 = vpack.c.bf16 %v70_v33, %v69_v29  ;;  %v162_v41 = vld [vmem:[#allocation3 + $0xb0] sm:$0xff]  ;;  %v72_v42 = vld [vmem:[#allocation3 + $0x108] sm:$0xff] }
  0x40   :  { %v497_v39 = vpack.c.bf16 %v163_v35, %v161_v34  ;;  %v160_v40 = vld [vmem:[#allocation3 + $0x98] sm:$0xff]  ;;  %v165_v43 = vld [vmem:[#allocation3 + $0xd0] sm:$0xff]  ;;  %v167_v44 = vld [vmem:[#allocation3 + $0xe8] sm:$0xff]  ;;  %v477_v46 = vpack.c.bf16 %v72_v42, %v71_v38 }
  0x41   :  { %v499_v45 = vpack.c.bf16 %v162_v41, %v160_v40  ;;  %v73_v47 = vld [vmem:[#allocation3 + $0x120] sm:$0xff]  ;;  %v501_v48 = vpack.c.bf16 %v167_v44, %v165_v43  ;;  %v164_v49 = vld [vmem:[#allocation3 + $0xc8] sm:$0xff]  ;;  %v74_v51 = vld [vmem:[#allocation3 + $0x138] sm:$0xff] }
  0x42   :  { %469 = vmatpush3.bf16.msra.mxu0 %v468_v17  ;;  %492 = vmatpush1.bf16.msra.mxu1 %v491_v27  ;;  %v166_v50 = vld [vmem:[#allocation3 + $0xe0] sm:$0xff]  ;;  %v171_v53 = vld [vmem:[#allocation3 + $0x118] sm:$0xff]  ;;  %v480_v55 = vpack.c.bf16 %v74_v51, %v73_v47  ;;  %v75_v56 = vld [vmem:[#allocation3 + $0x150] sm:$0xff] }
  0x43   :  { %470 = vmatprep.subr.bf16.mxu0 %v636_v0  ;;  %494 = vmatprep.subr.bf16.mxu1 %v493_v30  ;;  %v169_v52 = vld [vmem:[#allocation3 + $0x100] sm:$0xff]  ;;  %v503_v54 = vpack.c.bf16 %v166_v50, %v164_v49  ;;  %v168_v58 = vld [vmem:[#allocation3 + $0xf8] sm:$0xff]  ;;  %v170_v59 = vld [vmem:[#allocation3 + $0x110] sm:$0xff] }
  0x44   :  { %v505_v57 = vpack.c.bf16 %v171_v53, %v169_v52  ;;  %v76_v60 = vld [vmem:[#allocation3 + $0x168] sm:$0xff]  ;;  %v173_v61 = vld [vmem:[#allocation3 + $0x130] sm:$0xff]  ;;  %v507_v63 = vpack.c.bf16 %v170_v59, %v168_v58  ;;  %v174_v4 = vld [vmem:[#allocation3 + $0x140] sm:$0xff] }
  0x45   :  { %v175_v62 = vld [vmem:[#allocation3 + $0x148] sm:$0xff]  ;;  %v483_v1 = vpack.c.bf16 %v76_v60, %v75_v56  ;;  %v177_v5 = vld [vmem:[#allocation3 + $0x160] sm:$0xff]  ;;  %v179_v6 = vld [vmem:[#allocation3 + $0x178] sm:$0xff] }
  0x46   :  { %472 = vmatpush3.bf16.msra.mxu0 %v471_v28  ;;  %496 = vmatpush1.bf16.msra.mxu1 %v495_v36  ;;  %v509_v2 = vpack.c.bf16 %v175_v62, %v173_v61  ;;  %v172_v3 = vld [vmem:[#allocation3 + $0x128] sm:$0xff]  ;;  %v711_v8 = vld [vmem:[#allocation2] sm:$0xff]  ;;  %v513_v9 = vpack.c.bf16 %v179_v6, %v177_v5  ;;  %v178_v11 = vld [vmem:[#allocation3 + $0x170] sm:$0xff] }
  0x47   :  { %473 = vmatprep.subr.bf16.mxu0 %v636_v0  ;;  %498 = vmatprep.subr.bf16.mxu1 %v497_v39  ;;  %v511_v7 = vpack.c.bf16 %v174_v4, %v172_v3  ;;  %v176_v10 = vld [vmem:[#allocation3 + $0x158] sm:$0xff]  ;;  %v269_v13 = vld [vmem:[#allocation5 + $0x80] sm:$0xff]  ;;  %v270_v14 = vld [vmem:[#allocation5 + $0x88] sm:$0xff] }
  0x48   :  { %v515_v12 = vpack.c.bf16 %v178_v11, %v176_v10  ;;  %v517_v15 = vpack.c.bf16 %v270_v14, %v269_v13  ;;  %v254_v16 = vld [vmem:[#allocation5 + $0x8] sm:$0xff]  ;;  %v271_v17 = vld [vmem:[#allocation5 + $0x90] sm:$0xff]  ;;  %v272_v18 = vld [vmem:[#allocation5 + $0x98] sm:$0xff] }
  0x49   :  { %v521_v20 = vpack.c.bf16 %v272_v18, %v271_v17  ;;  %v255_v21 = vld [vmem:[#allocation5 + $0x10] sm:$0xff]  ;;  %v256_v22 = vld [vmem:[#allocation5 + $0x18] sm:$0xff]  ;;  %v273_v23 = vld [vmem:[#allocation5 + $0xa0] sm:$0xff] }
  0x4a   :  { %475 = vmatpush3.bf16.msra.mxu0 %v474_v37  ;;  %500 = vmatpush1.bf16.msra.mxu1 %v499_v45  ;;  %v274_v24 = vld [vmem:[#allocation5 + $0xa8] sm:$0xff]  ;;  %v523_v25 = vpack.c.bf16 %v256_v22, %v255_v21  ;;  %v257_v27 = vld [vmem:[#allocation5 + $0x20] sm:$0xff]  ;;  %v275_v29 = vld [vmem:[#allocation5 + $0xb0] sm:$0xff] }
  0x4b   :  { %476 = vmatprep.subr.bf16.mxu0 %v636_v0  ;;  %502 = vmatprep.subr.bf16.mxu1 %v501_v48  ;;  %v525_v26 = vpack.c.bf16 %v274_v24, %v273_v23  ;;  %v258_v28 = vld [vmem:[#allocation5 + $0x28] sm:$0xff]  ;;  %v276_v30 = vld [vmem:[#allocation5 + $0xb8] sm:$0xff]  ;;  %v259_v33 = vld [vmem:[#allocation5 + $0x30] sm:$0xff] }
  0x4c   :  { %v527_v31 = vpack.c.bf16 %v258_v28, %v257_v27  ;;  %v529_v32 = vpack.c.bf16 %v276_v30, %v275_v29  ;;  %v260_v34 = vld [vmem:[#allocation5 + $0x38] sm:$0xff]  ;;  %v277_v35 = vld [vmem:[#allocation5 + $0xc0] sm:$0xff]  ;;  %v278_v36 = vld [vmem:[#allocation5 + $0xc8] sm:$0xff] }
  0x4d   :  { %v531_v37 = vpack.c.bf16 %v260_v34, %v259_v33  ;;  %v533_v38 = vpack.c.bf16 %v278_v36, %v277_v35  ;;  %v261_v39 = vld [vmem:[#allocation5 + $0x40] sm:$0xff]  ;;  %v262_v40 = vld [vmem:[#allocation5 + $0x48] sm:$0xff]  ;;  %v279_v41 = vld [vmem:[#allocation5 + $0xd0] sm:$0xff] }
  0x4e   :  { %478 = vmatpush3.bf16.msra.mxu0 %v477_v46  ;;  %504 = vmatpush1.bf16.msra.mxu1 %v503_v54  ;;  %v280_v42 = vld [vmem:[#allocation5 + $0xd8] sm:$0xff]  ;;  %v535_v43 = vpack.c.bf16 %v262_v40, %v261_v39  ;;  %v263_v45 = vld [vmem:[#allocation5 + $0x50] sm:$0xff]  ;;  %v281_v47 = vld [vmem:[#allocation5 + $0xe0] sm:$0xff] }
  0x4f   :  { %479 = vmatprep.subr.bf16.mxu0 %v636_v0  ;;  %506 = vmatprep.subr.bf16.mxu1 %v505_v57  ;;  %v537_v44 = vpack.c.bf16 %v280_v42, %v279_v41  ;;  %v264_v46 = vld [vmem:[#allocation5 + $0x58] sm:$0xff]  ;;  %v282_v48 = vld [vmem:[#allocation5 + $0xe8] sm:$0xff]  ;;  %v265_v51 = vld [vmem:[#allocation5 + $0x60] sm:$0xff] }
  0x50   :  { %v539_v49 = vpack.c.bf16 %v264_v46, %v263_v45  ;;  %v541_v50 = vpack.c.bf16 %v282_v48, %v281_v47  ;;  %v266_v52 = vld [vmem:[#allocation5 + $0x68] sm:$0xff]  ;;  %v77_v54 = vld [vmem:[#allocation7] sm:$0xff]  ;;  %v283_v58 = vld [vmem:[#allocation5 + $0xf0] sm:$0xff] }
  0x51   :  { %v543_v53 = vpack.c.bf16 %v266_v52, %v265_v51  ;;  %v284_v59 = vld [vmem:[#allocation5 + $0xf8] sm:$0xff]  ;;  %v267_v61 = vld [vmem:[#allocation5 + $0x70] sm:$0xff] }
  0x52   :  { %481 = vmatpush3.bf16.msra.mxu0 %v480_v55  ;;  %508 = vmatpush1.bf16.msra.mxu1 %v507_v63  ;;  %v545_v60 = vpack.c.bf16 %v284_v59, %v283_v58  ;;  %v268_v62 = vld [vmem:[#allocation5 + $0x78] sm:$0xff] }
  0x53   :  { %482 = vmatprep.subr.bf16.mxu0 %v636_v0  ;;  %510 = vmatprep.subr.bf16.mxu1 %v509_v2  ;;  %v253_v0 = vld [vmem:[#allocation5] sm:$0xff]  ;;  %v547_v63 = vpack.c.bf16 %v268_v62, %v267_v61  ;;  %v181_v2 = vld [vmem:[#allocation7 + $0x10] sm:$0xff]  ;;  %v285_v10 = vld [vmem:[#allocation7 + $0x18] sm:$0xff] }
  0x54   :  { %v519_v19 = vpack.c.bf16 %v254_v16, %v253_v0 }
  0x56   :  { %484 = vmatpush3.bf16.msra.mxu0 %v483_v1  ;;  %512 = vmatpush1.bf16.msra.mxu1 %v511_v7  ;;  %v180_v1 = vld [vmem:[#allocation7 + $0x8] sm:$0xff] }
  0x57   :  { %514 = vmatprep.subr.bf16.mxu1 %v513_v9  ;;  %518 = vmatprep.subr.bf16.mxu0 %v517_v15 }
  0x59   :  { %459 = vmatmul.mubr.f32.vlgmr.msra.gmra.mrb[0].mxu0 %v711_v8 }
  0x5a   :  { %516 = vmatpush1.bf16.msra.mxu1 %v515_v12  ;;  %520 = vmatpush3.bf16.msra.mxu0 %v519_v19 }
  0x5b   :  { %522 = vmatprep.subr.bf16.mxu0 %v521_v20 }
  0x5e   :  { %524 = vmatpush3.bf16.msra.mxu0 %v523_v25 }
  0x5f   :  { %526 = vmatprep.subr.bf16.mxu0 %v525_v26 }
  0x62   :  { %528 = vmatpush3.bf16.msra.mxu0 %v527_v31 }
  0x63   :  { %530 = vmatprep.subr.bf16.mxu0 %v529_v32 }
  0x66   :  { %532 = vmatpush3.bf16.msra.mxu0 %v531_v37 }
  0x67   :  { %534 = vmatprep.subr.bf16.mxu0 %v533_v38 }
  0x6a   :  { %536 = vmatpush3.bf16.msra.mxu0 %v535_v43 }
  0x6b   :  { %538 = vmatprep.subr.bf16.mxu0 %v537_v44 }
  0x6e   :  { %540 = vmatpush3.bf16.msra.mxu0 %v539_v49 }
  0x6f   :  { %542 = vmatprep.subr.bf16.mxu0 %v541_v50 }
  0x72   :  { %544 = vmatpush3.bf16.msra.mxu0 %v543_v53 }
  0x73   :  { %546 = vmatprep.subr.bf16.mxu0 %v545_v60 }
  0x76   :  { %548 = vmatpush3.bf16.msra.mxu0 %v547_v63 }
 0x12c   :  { %v144_v55 = vpop.f32.mrb[0].mxu0 }
 0x12d   :  { %v145_v56 = vadd.f32 %v144_v55, %v77_v54  ;;  %v460_v57 = vpop.f32.mrb[1].mxu0 }
 0x12f   :  { %247 = vmatmul.mubr.f32.vlgmr.msra.gmra.mrb[0].mxu1 %v145_v56 }
 0x202   :  { %v248_v3 = vpop.f32.mrb[0].mxu1 }
 0x203   :  { %v249_v4 = vadd.f32 %v248_v3, %v180_v1  ;;  %v250_v5 = vpop.f32.mrb[1].mxu1 }
 0x204   :  { %v251_v6 = vadd.f32 %v250_v5, %v181_v2 }
 0x205   :  { %v363_v7 = vsub.f32 %v145_v56, %v249_v4 }
 0x206   :  { %350 = vmatprep.mubr.f32.mxu0 %v251_v6 }
 0x207   :  { %365 = vst [vmem:[%s728_s4 + $0x8] sm:$0xff] %v363_v7  ;;  %351 = vmatmul.mubr.f32.vlgmr.msra.gmra.mrb[2].mxu0 %v249_v4 }
 0x2da   :  { %v423_v9 = vpop.f32.mrb[2].mxu0 }
 0x2db   :  { %v424_v11 = vpop.f32.mrb[3].mxu0 }
 0x2dc   :  { %v425_v12 = vadd.f32 %v424_v11, %v423_v9 }
 0x2de   :  { %v353_v13 = vadd.f32 %v425_v12, %v285_v10 }
 0x2e0   :  { %356 = vadd.xlane.f32.xlu0 %v353_v13 }
 0x36d   :  { %v357_v14 = vpop.xlane.xlu0 %356 }
 0x36e   :  { %v358_v0 = vmax.f32 %v357_v14, 1.0 }
 0x370   :  { %v359_v15 = vmul.f32 %v358_v0, %v353_v13 }
 0x372   :  { %v360_v16 = vadd.f32 %v359_v15, %v353_v13 }
 0x374   :  { %v361_v17 = vsub.f32 %v360_v16, %v711_v8 }
 0x376   :  { %v362_v18 = vmax.f32 %v361_v17, 0.0 }
 0x378   :  { %364 = vst [vmem:[%s728_s4] sm:$0xff] %v362_v18  ;;  %v366_v19 = vadd.f32 %v363_v7, %v362_v18 }
 0x37a   :  { %367 = vst [vmem:[%s728_s4 + $0x10] sm:$0xff] %v366_v19 }
 0x37b   :  { %372 = vsyncpa [#allocation4], 1 }
 0x37c   :  { %373 = vsyncpa [#allocation6], 1 }

</bundles_post_ra>
